<compile_context>
chip_gen: v7x
topology: tpu7x:2x2x1
jax: 0.10.0
libtpu: 0.0.40
codegen_flags: <defaults>
</compile_context>

<pallas_src>
import functools

import jax
import jax.numpy as jnp
import numpy as np
from jax.experimental import pallas as pl
from jax.experimental.pallas import tpu as pltpu


_LANES = 512               # lane tile (multiple of 128)
_MIN_PALLAS_ELEMS = 65536  # below this, XLA's fused elementwise+reduce is faster


def _device_tuning():
    """Generation-aware (tile_rows, num_parallel). Safe defaults on unknown chips."""
    tile_rows, num_parallel = 1024, 1          # v5e / unknown: 8 MiB of streamed buffers
    try:
        kind = jax.devices()[0].device_kind.lower()
    except Exception:
        return tile_rows, num_parallel
    if "v6" in kind:
        tile_rows = 2048                       # 16 MiB double-buffered inputs, 1 TC
    elif "v7" in kind or "7x" in kind:
        tile_rows, num_parallel = 2048, 2      # engage both TensorCores on v7x
    return tile_rows, num_parallel


def _bce_kernel(x_ref, t_ref, out_ref, acc_ref, *,
                tile_rows, lanes, tiles_per_chunk, num_tiles, tail_valid,
                scale, bias):
    p = pl.program_id(0)                 # parallel chunk index
    g = pl.program_id(1)                 # reduction step within the chunk
    ti = p * tiles_per_chunk + g         # global tile index (may exceed num_tiles-1
                                         # on a ragged parallel split; those steps add 0)

    @pl.when(g == 0)
    def _init():
        acc_ref[...] = jnp.zeros_like(acc_ref)

    x = x_ref[...].astype(jnp.float32)
    t = t_ref[...].astype(jnp.float32)
    # Fused label smoothing, baked in at trace time (folds away when smooth=False).
    if scale != 1.0 or bias != 0.0:
        t = jnp.float32(scale) * t + jnp.float32(bias)

    # Numerically stable BCE with logits (same formula PyTorch uses):
    #   loss = max(x, 0) - x*t + log1p(exp(-|x|))
    loss = jnp.maximum(x, 0.0) - x * t + jnp.log1p(jnp.exp(-jnp.abs(x)))

    def _fold(v):
        # (tile_rows, lanes) -> (8, lanes): pure vreg-wise VPU adds, no XLU.
        return v.reshape(tile_rows // 8, 8, lanes).sum(axis=0)

    needs_tail_mask = tail_valid < tile_rows * lanes
    steady_limit = num_tiles - 1 if needs_tail_mask else num_tiles

    # Steady state: no per-element mask, just the folded accumulate.
    @pl.when(ti < steady_limit)
    def _steady():
        acc_ref[...] += _fold(loss)

    if needs_tail_mask:
        # Final tile only: mask padded zeros / stale out-of-bounds rows with a select
        # (garbage logits can produce NaN/Inf; a select discards them).
        @pl.when(ti == num_tiles - 1)
        def _last():
            row = jax.lax.broadcasted_iota(jnp.int32, (tile_rows, lanes), 0)
            lane = jax.lax.broadcasted_iota(jnp.int32, (tile_rows, lanes), 1)
            local_flat = row * lanes + lane          # < tile_rows*lanes: no overflow risk
            masked = jnp.where(local_flat < tail_valid, loss, 0.0)
            acc_ref[...] += _fold(masked)

    @pl.when(g == tiles_per_chunk - 1)
    def _finalize():
        # One cross-lane/sublane reduce per chunk; lane-dense (1, 8, 128) store.
        part = jnp.sum(acc_ref[...])
        out_ref[...] = jnp.full(out_ref.shape, part, dtype=out_ref.dtype)


def bce_log_loss(output, target, smooth=False, eps=None, *,
                 min_pallas_elems=_MIN_PALLAS_ELEMS,
                 lanes=_LANES, tile_rows=None, num_parallel=None):
    """Pallas equivalent of BCELogLoss.forward (mean-reduced BCE with logits)."""
    assert output.shape == target.shape
    n = int(np.prod(output.shape))
    assert n > 0

    if smooth:
        # TODO(synk): PyTorch draws eps ~ U(0.01, 0.05) with np.random at every forward
        # (non-deterministic host RNG); here eps defaults to a fixed 0.03 and can be
        # overridden via the `eps` argument.
        if eps is None:
            eps = 0.03
        num_classes = output.shape[1]
        scale = 1.0 - float(eps)
        bias = float(eps) / float(num_classes)
    else:
        scale, bias = 1.0, 0.0

    # Small-input fast path: a single fused XLA elementwise+reduce beats the
    # pallas_call launch / per-grid-step overhead at these sizes.
    if n < min_pallas_elems:
        x = output.astype(jnp.float32)
        t = target.astype(jnp.float32)
        if scale != 1.0 or bias != 0.0:
            t = scale * t + bias
        return jnp.mean(jnp.maximum(x, 0.0) - x * t + jnp.log1p(jnp.exp(-jnp.abs(x))))

    auto_tile, auto_par = _device_tuning()
    if tile_rows is None:
        tile_rows = auto_tile
    if num_parallel is None:
        num_parallel = auto_par

    # ---- Lane-dense reshape; pad only to an 8*lanes (4096-elem) granularity ----
    pad_granularity = 8 * lanes
    n_pad = -(-n // pad_granularity) * pad_granularity
    x_flat = output.reshape(-1)
    t_flat = target.reshape(-1)
    if n_pad != n:
        # TODO(synk): this pad/reshape emits a relayout copy over both inputs; feeding
        # pre-flattened, lane-aligned tensors avoids that extra HBM pass upstream.
        x_flat = jnp.pad(x_flat, (0, n_pad - n))
        t_flat = jnp.pad(t_flat, (0, n_pad - n))
    rows = n_pad // lanes                      # multiple of 8
    x2d = x_flat.reshape(rows, lanes)
    t2d = t_flat.reshape(rows, lanes)

    tile_rows = min(tile_rows, rows)           # keep block within the array; still %8==0
    num_tiles = pl.cdiv(rows, tile_rows)
    num_parallel = max(1, min(num_parallel, num_tiles))
    tiles_per_chunk = pl.cdiv(num_tiles, num_parallel)
    tail_valid = n - (num_tiles - 1) * tile_rows * lanes   # valid elems in the final tile

    kernel = functools.partial(
        _bce_kernel,
        tile_rows=tile_rows, lanes=lanes,
        tiles_per_chunk=tiles_per_chunk, num_tiles=num_tiles,
        tail_valid=tail_valid, scale=scale, bias=bias)

    if num_parallel * tiles_per_chunk == num_tiles:
        in_map = lambda p, g: (p * tiles_per_chunk + g, 0)
    else:
        # Ragged parallel split: clamp so no block is fully out of bounds; the kernel's
        # pl.when gating makes the duplicated reads contribute nothing.
        last_tile = num_tiles - 1
        in_map = lambda p, g: (jnp.minimum(p * tiles_per_chunk + g, last_tile), 0)

    partials = pl.pallas_call(
        kernel,
        out_shape=jax.ShapeDtypeStruct((num_parallel, 8, 128), jnp.float32),
        grid_spec=pltpu.PrefetchScalarGridSpec(
            num_scalar_prefetch=0,
            grid=(num_parallel, tiles_per_chunk),
            in_specs=[
                pl.BlockSpec((tile_rows, lanes), in_map),
                pl.BlockSpec((tile_rows, lanes), in_map),
            ],
            out_specs=pl.BlockSpec((1, 8, 128), lambda p, g: (p, 0, 0)),
            scratch_shapes=[pltpu.VMEM((8, lanes), jnp.float32)],
        ),
        compiler_params=pltpu.CompilerParams(
            dimension_semantics=("parallel", "arbitrary")),
    )(x2d, t2d)

    # One partial sum per parallel chunk; divide once by the TRUE element count.
    return jnp.sum(partials[:, 0, 0]) / jnp.float32(n)


if __name__ == "__main__":
    key = jax.random.PRNGKey(0)
    k1, k2, k3, k4 = jax.random.split(key, 4)

    def ref_loss(x, t, scale=1.0, bias=0.0):
        x = x.astype(jnp.float32)
        t = scale * t.astype(jnp.float32) + bias
        return jnp.mean(jnp.maximum(x, 0.0) - x * t + jnp.log1p(jnp.exp(-jnp.abs(x))))

    # Small CXR-style multilabel shape (batch=2, classes=14): force the Pallas path so
    # the 4096-elem padding + final-tile masking logic is exercised end to end.
    B, C = 2, 14
    logits = jax.random.normal(k1, (B, C), dtype=jnp.float32)
    targets = (jax.random.uniform(k2, (B, C)) > 0.5).astype(jnp.float32)

    loss = jax.block_until_ready(
        bce_log_loss(logits, targets, smooth=False, min_pallas_elems=0))
    ref = ref_loss(logits, targets)
    assert jnp.allclose(loss, ref, rtol=1e-4, atol=1e-5), (loss, ref)

    # smooth=True with a deterministic eps, still through the Pallas kernel (fused).
    eps = 0.03
    loss_s = jax.block_until_ready(
        bce_log_loss(logits, targets, smooth=True, eps=eps, min_pallas_elems=0))
    ref_s = ref_loss(logits, targets, 1.0 - eps, eps / C)
    assert jnp.allclose(loss_s, ref_s, rtol=1e-4, atol=1e-5), (loss_s, ref_s)

    # Larger batch: exact lane multiple (no padding), single-tile fast layout.
    B2, C2 = 8192, 14
    logits2 = jax.random.normal(k3, (B2, C2), dtype=jnp.float32)
    targets2 = (jax.random.uniform(k4, (B2, C2)) > 0.5).astype(jnp.float32)
    loss2 = jax.block_until_ready(bce_log_loss(logits2, targets2, min_pallas_elems=0))
    ref2 = ref_loss(logits2, targets2)
    assert jnp.allclose(loss2, ref2, rtol=1e-4, atol=1e-5), (loss2, ref2)

    # Same data through a multi-tile, ragged 2-way-parallel split (exercises the
    # steady-state accumulate, clamped index_map and final-tile mask together).
    loss3 = jax.block_until_ready(
        bce_log_loss(logits2, targets2, min_pallas_elems=0,
                     tile_rows=48, num_parallel=2))
    assert jnp.allclose(loss3, ref2, rtol=1e-4, atol=1e-5), (loss3, ref2)

    print("KERNEL_OK")
</pallas_src>

<mosaic_0001>
module attributes {stable_mosaic.version = 11 : i64} {
  func.func @_bce_kernel(%arg0: i32, %arg1: i32, %arg2: memref<8x512xf32, #tpu.memory_space<vmem>>, %arg3: memref<8x512xf32, #tpu.memory_space<vmem>>, %arg4: memref<1x8x128xf32, #tpu.memory_space<vmem>>, %arg5: memref<8x512xf32, #tpu.memory_space<vmem>>) attributes {dimension_semantics = [#tpu.dimension_semantics<parallel>, #tpu.dimension_semantics<arbitrary>], iteration_bounds = array<i64: 1, 1>, scalar_prefetch = 0 : i64, scratch_operands = 1 : i64, tpu.core_type = #tpu.core_type<tc>, window_params = [{transform_indices = @transform_0, window_bounds = array<i64: 8, 512>}, {transform_indices = @transform_1, window_bounds = array<i64: 8, 512>}, {transform_indices = @transform_2, window_bounds = array<i64: 1, 8, 128>}]} {
    %c1_i32 = arith.constant 1 : i32
    %0 = arith.muli %arg0, %c1_i32 : i32
    %1 = arith.addi %0, %arg1 : i32
    %c0_i32 = arith.constant 0 : i32
    %2 = arith.cmpi eq, %arg1, %c0_i32 : i32
    %3 = arith.extui %2 : i1 to i32
    %c0_i32_0 = arith.constant 0 : i32
    %4 = arith.cmpi ne, %3, %c0_i32_0 : i32
    scf.if %4 {
      %cst_11 = arith.constant 0.000000e+00 : f32
      %26 = vector.broadcast %cst_11 : f32 to vector<8x512xf32>
      %c0_12 = arith.constant 0 : index
      %c0_13 = arith.constant 0 : index
      %27 = vector.load %arg5[%c0_12, %c0_13] : memref<8x512xf32, #tpu.memory_space<vmem>>, vector<8x512xf32>
      tpu.vector_store %arg5[%c0_12, %c0_13], %26 {strides = array<i32>} : memref<8x512xf32, #tpu.memory_space<vmem>>, vector<8x512xf32>,
    } else {
    }
    %c0 = arith.constant 0 : index
    %c0_1 = arith.constant 0 : index
    %5 = vector.load %arg2[%c0, %c0_1] : memref<8x512xf32, #tpu.memory_space<vmem>>, vector<8x512xf32>
    %c0_2 = arith.constant 0 : index
    %c0_3 = arith.constant 0 : index
    %6 = vector.load %arg3[%c0_2, %c0_3] : memref<8x512xf32, #tpu.memory_space<vmem>>, vector<8x512xf32>
    %cst = arith.constant 0.000000e+00 : f32
    %7 = vector.broadcast %cst : f32 to vector<8x512xf32>
    %8 = arith.maximumf %5, %7 : vector<8x512xf32>
    %9 = arith.mulf %5, %6 : vector<8x512xf32>
    %10 = arith.subf %8, %9 : vector<8x512xf32>
    %11 = math.absf %5 : vector<8x512xf32>
    %cst_4 = arith.constant 0.000000e+00 : f32
    %12 = vector.broadcast %cst_4 : f32 to vector<8x512xf32>
    %13 = arith.subf %12, %11 : vector<8x512xf32>
    %14 = math.exp %13 : vector<8x512xf32>
    %15 = math.log1p %14 : vector<8x512xf32>
    %16 = arith.addf %10, %15 : vector<8x512xf32>
    %c0_i32_5 = arith.constant 0 : i32
    %17 = arith.cmpi slt, %1, %c0_i32_5 : i32
    %18 = arith.extui %17 : i1 to i32
    %c0_i32_6 = arith.constant 0 : i32
    %19 = arith.cmpi ne, %18, %c0_i32_6 : i32
    scf.if %19 {
      %c0_11 = arith.constant 0 : index
      %c0_12 = arith.constant 0 : index
      %26 = vector.load %arg5[%c0_11, %c0_12] : memref<8x512xf32, #tpu.memory_space<vmem>>, vector<8x512xf32>
      %27 = vector.shape_cast %16 : vector<8x512xf32> to vector<1x8x512xf32>
      %cst_13 = arith.constant dense<0.000000e+00> : vector<8x512xf32>
      %28 = vector.multi_reduction <add>, %27, %cst_13 [0] : vector<1x8x512xf32> to vector<8x512xf32>
      %29 = arith.addf %26, %28 : vector<8x512xf32>
      %c0_14 = arith.constant 0 : index
      %c0_15 = arith.constant 0 : index
      %30 = vector.load %arg5[%c0_14, %c0_15] : memref<8x512xf32, #tpu.memory_space<vmem>>, vector<8x512xf32>
      tpu.vector_store %arg5[%c0_14, %c0_15], %29 {strides = array<i32>} : memref<8x512xf32, #tpu.memory_space<vmem>>, vector<8x512xf32>,
    } else {
    }
    %c0_i32_7 = arith.constant 0 : i32
    %20 = arith.cmpi eq, %1, %c0_i32_7 : i32
    %21 = arith.extui %20 : i1 to i32
    %c0_i32_8 = arith.constant 0 : i32
    %22 = arith.cmpi ne, %21, %c0_i32_8 : i32
    scf.if %22 {
      %26 = tpu.iota {dimensions = array<i32: 0>} : vector<8x512xi32>
      %27 = tpu.iota {dimensions = array<i32: 1>} : vector<8x512xi32>
      %c512_i32 = arith.constant 512 : i32
      %28 = vector.broadcast %c512_i32 : i32 to vector<8x512xi32>
      %29 = arith.muli %26, %28 : vector<8x512xi32>
      %30 = arith.addi %29, %27 : vector<8x512xi32>
      %c28_i32 = arith.constant 28 : i32
      %31 = vector.broadcast %c28_i32 : i32 to vector<8x512xi32>
      %32 = arith.cmpi slt, %30, %31 : vector<8x512xi32>
      %cst_11 = arith.constant 0.000000e+00 : f32
      %33 = vector.broadcast %cst_11 : f32 to vector<8x512xf32>
      %34 = arith.select %32, %16, %33 : vector<8x512xi1>, vector<8x512xf32>
      %c0_12 = arith.constant 0 : index
      %c0_13 = arith.constant 0 : index
      %35 = vector.load %arg5[%c0_12, %c0_13] : memref<8x512xf32, #tpu.memory_space<vmem>>, vector<8x512xf32>
      %36 = vector.shape_cast %34 : vector<8x512xf32> to vector<1x8x512xf32>
      %cst_14 = arith.constant dense<0.000000e+00> : vector<8x512xf32>
      %37 = vector.multi_reduction <add>, %36, %cst_14 [0] : vector<1x8x512xf32> to vector<8x512xf32>
      %38 = arith.addf %35, %37 : vector<8x512xf32>
      %c0_15 = arith.constant 0 : index
      %c0_16 = arith.constant 0 : index
      %39 = vector.load %arg5[%c0_15, %c0_16] : memref<8x512xf32, #tpu.memory_space<vmem>>, vector<8x512xf32>
      tpu.vector_store %arg5[%c0_15, %c0_16], %38 {strides = array<i32>} : memref<8x512xf32, #tpu.memory_space<vmem>>, vector<8x512xf32>,
    } else {
    }
    %c0_i32_9 = arith.constant 0 : i32
    %23 = arith.cmpi eq, %arg1, %c0_i32_9 : i32
    %24 = arith.extui %23 : i1 to i32
    %c0_i32_10 = arith.constant 0 : i32
    %25 = arith.cmpi ne, %24, %c0_i32_10 : i32
    scf.if %25 {
      %c0_11 = arith.constant 0 : index
      %c0_12 = arith.constant 0 : index
      %26 = vector.load %arg5[%c0_11, %c0_12] : memref<8x512xf32, #tpu.memory_space<vmem>>, vector<8x512xf32>
      %27 = vector.shape_cast %26 : vector<8x512xf32> to vector<1x8x512xf32>
      %cst_13 = arith.constant dense<0.000000e+00> : vector<1xf32>
      %28 = vector.multi_reduction <add>, %27, %cst_13 [1, 2] : vector<1x8x512xf32> to vector<1xf32>
      %29 = vector.shape_cast %28 : vector<1xf32> to vector<1x1x1xf32>
      %30 = vector.extract %29[0, 0, 0] : f32 from vector<1x1x1xf32>
      %31 = vector.broadcast %30 : f32 to vector<1x8x128xf32>
      %c0_14 = arith.constant 0 : index
      %c0_15 = arith.constant 0 : index
      %c0_16 = arith.constant 0 : index
      %32 = vector.load %arg4[%c0_14, %c0_15, %c0_16] : memref<1x8x128xf32, #tpu.memory_space<vmem>>, vector<1x8x128xf32>
      tpu.vector_store %arg4[%c0_14, %c0_15, %c0_16], %31 {strides = array<i32>} : memref<1x8x128xf32, #tpu.memory_space<vmem>>, vector<1x8x128xf32>,
    } else {
    }
    return
  }
  func.func @transform_0(%arg0: i32, %arg1: i32) -> (i32, i32) {
    %c1_i32 = arith.constant 1 : i32
    %0 = arith.muli %arg0, %c1_i32 : i32
    %1 = arith.addi %0, %arg1 : i32
    %c0_i32 = arith.constant 0 : i32
    %c0_i32_0 = arith.constant 0 : i32
    return %1, %c0_i32 : i32, i32
  }
  func.func @transform_1(%arg0: i32, %arg1: i32) -> (i32, i32) {
    %c1_i32 = arith.constant 1 : i32
    %0 = arith.muli %arg0, %c1_i32 : i32
    %1 = arith.addi %0, %arg1 : i32
    %c0_i32 = arith.constant 0 : i32
    %c0_i32_0 = arith.constant 0 : i32
    return %1, %c0_i32 : i32, i32
  }
  func.func @transform_2(%arg0: i32, %arg1: i32) -> (i32, i32, i32) {
    %c0_i32 = arith.constant 0 : i32
    %c0_i32_0 = arith.constant 0 : i32
    %c0_i32_1 = arith.constant 0 : i32
    return %arg0, %c0_i32, %c0_i32_0 : i32, i32, i32
  }
}

</mosaic_0001>

<bundles_post_ra>
// kernel: tpu_custom_call.1
= control target key start
LH: loop header
LB: loop body
LE: loop exit
PB: predicated region body
PF: predicated region fallthrough
CT: control target
= control target key end

     0   :  { %7 = vsyncpa [#allocation4], 0  ;;  %s407_s0 = inlined_call_operand.hbm [shape: f32[8,512], index: 0, kind: input, shape index: {}]   ;;  %s408_s1 = inlined_call_operand.hbm [shape: f32[8,512], index: 1, kind: input, shape index: {}]   ;;  %s409_s2 = inlined_call_operand.hbm [shape: f32[1,8,128], index: 2, kind: output, shape index: {}]  }
   0x1   :  { %8 = vsyncpa [#allocation7], 0 }
   0x2   :  { %9 = vsyncpa [#allocation5], 0  ;;  %s321_s9 = smov [#allocation3]   ;;  %s322_s11 = smov [#allocation6]  }
   0x3   :  { %s20_s10 = sshll.u32 %s321_s9, 4  ;;  %s34_s12 = sshll.u32 %s322_s11, 4  ;;  %s21_s10 = int_to_ptr.vmem [resolvable:$true] %s20_s10  ;;  %s35_s12 = int_to_ptr.vmem [resolvable:$true] %s34_s12 }
   0x4   :  { %s249_s15 = scalar_lea.hbm %s407_s0, 512 }
   0x5   :  { %p250_p0 = scmp.ne.s32.totalorder %s407_s0, %s249_s15  ;;  %p253_p1 = scmp.lt.u32.totalorder %s249_s15, %s407_s0 }
   0x7   :  { %p255_p2 = pnand %p253_p1, %p250_p0 }
   0x9   :  { %258 = shalt.err (!%p255_p2)
}
   0xa   :  { %s259_s20 = scalar_lea.vmem %s21_s10, 512  ;;  %p264_p4 = scmp.lt.s32.totalorder %s21_s10, %s21_s10 }
   0xb   :  { %p260_p3 = scmp.ne.s32.totalorder %s21_s10, %s259_s20  ;;  %p265_p5 = scmp.lt.s32.totalorder %s259_s20, %s259_s20 }
   0xd   :  { %p266_p6 = por %p265_p5, %p264_p4 }
   0xf   :  { %p267_p7 = pnand %p266_p6, %p260_p3 }
  0x11   :  { %270 = shalt.err (!%p267_p7)
}
  0x12   :  { %23 = dma.hbm_to_vmem [thread:$0]  %s407_s0, 512, %s21_s10, [#allocation4]  }
  0x13   :  { %s271_s25 = scalar_lea.hbm %s408_s1, 512 }
  0x14   :  { %p272_p8 = scmp.ne.s32.totalorder %s408_s1, %s271_s25  ;;  %p275_p9 = scmp.lt.u32.totalorder %s271_s25, %s408_s1 }
  0x16   :  { %p277_p10 = pnand %p275_p9, %p272_p8 }
  0x18   :  { %280 = shalt.err (!%p277_p10)
}
  0x19   :  { %s281_s30 = scalar_lea.vmem %s35_s12, 512  ;;  %p286_p12 = scmp.lt.s32.totalorder %s35_s12, %s35_s12 }
  0x1a   :  { %p282_p11 = scmp.ne.s32.totalorder %s35_s12, %s281_s30  ;;  %p287_p13 = scmp.lt.s32.totalorder %s281_s30, %s281_s30 }
  0x1c   :  { %p288_p0 = por %p287_p13, %p286_p12 }
  0x1e   :  { %p289_p1 = pnand %p288_p0, %p282_p11 }
  0x20   :  { %292 = shalt.err (!%p289_p1)
}
  0x21   :  { %37 = dma.hbm_to_vmem [thread:$0]  %s408_s1, 512, %s35_s12, [#allocation7]  }
  0x22   :  { %315 = dma.done.wait [#allocation4], 512  }
  0x23   :  { %316 = vsyncadd [#allocation4], 4294966784 }
  0x24   :  { %317 = dma.done.wait [#allocation7], 512  }
  0x25   :  { %318 = vsyncadd [#allocation7], 4294966784  ;;  %v363_v0 = vld [vmem:[#allocation3] sm:$0xff]  ;;  %v365_v1 = vld [vmem:[#allocation3 + $0x8] sm:$0xff]  ;;  %v155_v16 = vlaneseq  ;;  %s323_s1 = smov [#allocation8]  }
  0x26   :  { %v367_v2 = vld [vmem:[#allocation3 + $0x10] sm:$0xff]  ;;  %v369_v3 = vld [vmem:[#allocation3 + $0x18] sm:$0xff]  ;;  %v75_v4 = vand.u32 2147483647, %v363_v0  ;;  %v76_v5 = vand.u32 2147483647, %v365_v1 }
  0x27   :  { %v77_v6 = vand.u32 2147483647, %v367_v2  ;;  %v78_v7 = vand.u32 2147483647, %v369_v3  ;;  %v156_v17 = vshrl.u32 %v155_v16, 7  ;;  %v158_v19 = vand.u32 127, %v155_v16 }
  0x28   :  { %v79_v8 = vsub.f32 0.0, %v75_v4  ;;  %v80_v9 = vsub.f32 0.0, %v76_v5  ;;  %v59_v31 = vld [vmem:[#allocation6] sm:$0xff]  ;;  %v60_v33 = vld [vmem:[#allocation6 + $0x8] sm:$0xff]  ;;  %v61_v37 = vld [vmem:[#allocation6 + $0x10] sm:$0xff]  ;;  %v63_v39 = vmax.f32 %v363_v0, 0.0 }
  0x29   :  { %v81_v10 = vsub.f32 0.0, %v77_v6  ;;  %v82_v11 = vsub.f32 0.0, %v78_v7  ;;  %v162_v26 = vmul.u32 512, %v156_v17  ;;  %v159_v28 = vadd.s32 128, %v158_v19  ;;  %v62_v38 = vld [vmem:[#allocation6 + $0x18] sm:$0xff]  ;;  %s218_s4 = sshll.u32 %s323_s1, 4  ;;  %s219_s4 = int_to_ptr.vmem [resolvable:$true] %s218_s4 }
  0x2a   :  { %v83_v12 = vmul.f32 1.442695, %v79_v8  ;;  %v85_v13 = vmul.f32 1.442695, %v80_v9  ;;  %v160_v34 = vadd.s32 256, %v158_v19  ;;  %v161_v35 = vadd.s32 384, %v158_v19  ;;  %p298_p3 = scmp.lt.s32.totalorder %s219_s4, %s219_s4 }
  0x2b   :  { %v87_v14 = vmul.f32 1.442695, %v81_v10  ;;  %v89_v15 = vmul.f32 1.442695, %v82_v11  ;;  %v163_v36 = vadd.s32 %v162_v26, %v158_v19  ;;  %v164_v42 = vadd.s32 %v162_v26, %v159_v28  ;;  %s293_s6 = scalar_lea.vmem %s219_s4, 128 }
  0x2c   :  { %233 = vpow2.f32 %v83_v12  ;;  %v64_v43 = vmax.f32 %v365_v1, 0.0  ;;  %v67_v44 = vmul.f32 %v59_v31, %v363_v0  ;;  %v65_v47 = vmax.f32 %v367_v2, 0.0  ;;  %p294_p2 = scmp.ne.s32.totalorder %s219_s4, %s293_s6  ;;  %p299_p4 = scmp.lt.s32.totalorder %s293_s6, %s293_s6 }
  0x2d   :  { %235 = vpow2.f32 %v85_v13  ;;  %v68_v48 = vmul.f32 %v60_v33, %v365_v1  ;;  %v66_v51 = vmax.f32 %v369_v3, 0.0  ;;  %v69_v52 = vmul.f32 %v61_v37, %v367_v2 }
  0x2e   :  { %237 = vpow2.f32 %v87_v14  ;;  %v70_v53 = vmul.f32 %v62_v38, %v369_v3  ;;  %v165_v57 = vadd.s32 %v162_v26, %v160_v34  ;;  %v166_v58 = vadd.s32 %v162_v26, %v161_v35  ;;  %p300_p5 = por %p299_p4, %p298_p3 }
  0x2f   :  { %239 = vpow2.f32 %v89_v15  ;;  %v71_v60 = vsub.f32 %v63_v39, %v67_v44  ;;  %v72_v1 = vsub.f32 %v64_v43, %v68_v48  ;;  %v73_v6 = vsub.f32 %v65_v47, %v69_v52 }
  0x30   :  { %v74_v7 = vsub.f32 %v66_v51, %v70_v53  ;;  %vm167_vm3 = vcmp.lt.s32.totalorder %v163_v36, 28  ;;  %vm168_vm5 = vcmp.lt.s32.totalorder %v164_v42, 28  ;;  %vm169_vm6 = vcmp.lt.s32.totalorder %v165_v57, 28  ;;  %p301_p6 = pnand %p300_p5, %p294_p2 }
  0x31   :  { %vm170_vm7 = vcmp.lt.s32.totalorder %v166_v58, 28 }
  0x36   :  { %v234_v18 = vpop.eup %233 }
  0x37   :  { %v236_v20 = vpop.eup %235  ;;  %v91_v21 = vadd.f32 1.0, %v234_v18  ;;  %v94_v27 = vmul.f32 -0.5, %v234_v18  ;;  %v97_v45 = vand.u32 2147483647, %v234_v18 }
  0x38   :  { %v238_v22 = vpop.eup %237  ;;  %v100_v23 = vadd.f32 1.0, %v236_v20  ;;  %v103_v29 = vmul.f32 -0.5, %v236_v20  ;;  %v106_v49 = vand.u32 2147483647, %v236_v20 }
  0x39   :  { %v240_v24 = vpop.eup %239  ;;  %241 = vlog2.f32 %v91_v21  ;;  %v109_v25 = vadd.f32 1.0, %v238_v22  ;;  %v112_v32 = vmul.f32 -0.5, %v238_v22  ;;  %v95_v40 = vadd.f32 1.0, %v94_v27 }
  0x3a   :  { %243 = vlog2.f32 %v100_v23  ;;  %v118_v30 = vadd.f32 1.0, %v240_v24  ;;  %v121_v41 = vmul.f32 -0.5, %v240_v24  ;;  %v104_v46 = vadd.f32 1.0, %v103_v29 }
  0x3b   :  { %245 = vlog2.f32 %v109_v25  ;;  %v113_v50 = vadd.f32 1.0, %v112_v32  ;;  %v115_v54 = vand.u32 2147483647, %v238_v22  ;;  %v96_v55 = vmul.f32 %v234_v18, %v95_v40 }
  0x3c   :  { %247 = vlog2.f32 %v118_v30  ;;  %v122_v56 = vadd.f32 1.0, %v121_v41  ;;  %vm383_vm0 = vcmp.lt.f32.partialorder %v97_v45, 0.0004427343  ;;  %v105_v62 = vmul.f32 %v236_v20, %v104_v46 }
  0x3d   :  { %v124_v63 = vand.u32 2147483647, %v240_v24  ;;  %vm387_vm1 = vcmp.lt.f32.partialorder %v106_v49, 0.0004427343  ;;  %v114_v3 = vmul.f32 %v238_v22, %v113_v50  ;;  %vm116_vm2 = vcmp.lt.f32.partialorder %v115_v54, 0.0004427343 }
  0x3e   :  { %v123_v11 = vmul.f32 %v240_v24, %v122_v56 }
  0x3f   :  { %vm125_vm4 = vcmp.lt.f32.partialorder %v124_v63, 0.0004427343 }
  0x43   :  { %v242_v59 = vpop.eup %241 }
  0x44   :  { %v244_v0 = vpop.eup %243  ;;  %v93_v4 = vmul.f32 0.6931472, %v242_v59 }
  0x45   :  { %v246_v5 = vpop.eup %245  ;;  %v102_v8 = vmul.f32 0.6931472, %v244_v0 }
  0x46   :  { %v99_v9 = vsel %vm383_vm0, %v96_v55, %v93_v4  ;;  %v111_v10 = vmul.f32 0.6931472, %v246_v5  ;;  %v248_v12 = vpop.eup %247 }
  0x47   :  { %v108_v13 = vsel %vm387_vm1, %v105_v62, %v102_v8  ;;  %v127_v14 = vadd.f32 %v99_v9, %v71_v60  ;;  %v120_v16 = vmul.f32 0.6931472, %v248_v12 }
  0x48   :  { %v117_v15 = vsel %vm116_vm2, %v114_v3, %v111_v10  ;;  %v128_v17 = vadd.f32 %v108_v13, %v72_v1 }
  0x49   :  { %v129_v18 = vadd.f32 %v117_v15, %v73_v6  ;;  %v171_v19 = vsel %vm167_vm3, %v127_v14, 0.0  ;;  %v126_v20 = vsel %vm125_vm4, %v123_v11, %v120_v16 }
  0x4a   :  { %v172_v21 = vsel %vm168_vm5, %v128_v17, 0.0  ;;  %v130_v22 = vadd.f32 %v126_v20, %v74_v7 }
  0x4b   :  { %v173_v23 = vsel %vm169_vm6, %v129_v18, 0.0  ;;  %v198_v24 = vadd.f32 %v172_v21, %v171_v19 }
  0x4c   :  { %v174_v25 = vsel %vm170_vm7, %v130_v22, 0.0 }
  0x4d   :  { %v199_v26 = vadd.f32 %v198_v24, %v173_v23 }
  0x4f   :  { %v200_v27 = vadd.f32 %v199_v26, %v174_v25 }
  0x51   :  { %201 = vadd.xlane.f32.xlu0 %v200_v27 }
  0xde   :  { %v202_v28 = vpop.xlane.xlu0 %201 }
  0xdf   :  { %v203_v29 = vrot.slane %v202_v28, 4 }
  0xe1   :  { %v204_v30 = vadd.f32 %v203_v29, %v202_v28 }
  0xe3   :  { %v205_v31 = vrot.slane %v204_v30, 2 }
  0xe5   :  { %v206_v32 = vadd.f32 %v205_v31, %v204_v30 }
  0xe7   :  { %v207_v33 = vrot.slane %v206_v32, 1 }
  0xe9   :  { %v208_v34 = vadd.f32 %v207_v33, %v206_v32 }
  0xeb   :  { %228 = vpush %v208_v34 }
 0x11c   :  { %s229_s5 = spop %228 }
 0x11d   :  { %v210_v35 = vstv %s229_s5 }
 0x11e   :  { %211 = vst [vmem:[#allocation8] sm:$0xff] %v210_v35 }
 0x11f   :  { %304 = shalt.err (!%p301_p6)
}
 0x120   :  { %s305_s9 = scalar_lea.hbm %s409_s2, 128 }
 0x121   :  { %p306_p7 = scmp.ne.s32.totalorder %s409_s2, %s305_s9  ;;  %p309_p8 = scmp.lt.u32.totalorder %s305_s9, %s409_s2 }
 0x123   :  { %p311_p9 = pnand %p309_p8, %p306_p7 }
 0x125   :  { %314 = shalt.err (!%p311_p9)
}
 0x126   :  { %221 = dma.vmem_to_hbm [thread:$0]  %s219_s4, 128, %s409_s2, [#allocation5]  }
 0x127   :  { %319 = dma.done.wait [#allocation5], 128  }
 0x128   :  { %320 = vsyncadd [#allocation5], 4294967168 }
 0x129   :  { %225 = vsyncpa [#allocation4], 1 }
 0x12a   :  { %226 = vsyncpa [#allocation7], 1 }
 0x12b   :  { %227 = vsyncpa [#allocation5], 1 }

</bundles_post_ra>
